<compile_context>
chip_gen: v7x
topology: tpu7x:2x2x1
jax: 0.10.0
libtpu: 0.0.40
codegen_flags: <defaults>
</compile_context>

<pallas_src>
import functools

import numpy as np
import jax
import jax.numpy as jnp
from jax import lax
from jax.experimental import pallas as pl
from jax.experimental.pallas import tpu as pltpu


def _dsconv_kernel(x_ref, wf_ref, bf_ref, mask_ref, o_ref, *, H, W, K, pad):
    # x_ref:    (1, Cin, H*W)      one image, channels-major, lane-dense
    # wf_ref:   (K*K, Cout, Cin)   fused (1x1 ∘ 3x3) weights, one (Cout,Cin) per tap
    # bf_ref:   (Cout, 1)          fused bias
    # mask_ref: (K*K, 1, H*W)      per-tap validity mask (reproduces zero padding)
    # o_ref:    (1, Cout, H*W)     lane-dense output (== NCHW memory order)
    L = H * W
    x = x_ref[0]                                   # (Cin, L) f32
    cout = o_ref.shape[1]

    acc = jnp.zeros((cout, L), jnp.float32)
    t = 0
    for ky in range(K):
        for kx in range(K):
            d = (ky - pad) * W + (kx - pad)        # flattened source offset of tap
            dd = d % L
            if dd == 0:
                shifted = x
            else:
                # circular lane shift: shifted[:, p] == x[:, (p + d) % L]
                shifted = jnp.concatenate([x[:, dd:], x[:, :dd]], axis=-1)
            # zero out positions whose source lies in the zero padding
            tap = shifted * mask_ref[t]            # (Cin, L) * (1, L)
            acc = acc + jnp.dot(wf_ref[t], tap,
                                preferred_element_type=jnp.float32)
            t += 1

    acc = acc + bf_ref[...]                        # (Cout, 1) broadcast over lanes
    o_ref[0] = acc.astype(o_ref.dtype)


def dsconv_forward(x_nchw, w1, b1, w2, b2, *, stride=1, padding=1):
    """x_nchw: (N, Cin, H, W); w1: (Cin, Cin, K, K); b1: (Cin,);
    w2: (Cout, Cin, 1, 1); b2: (Cout,). Returns (N, Cout, H, W) (NCHW)."""
    # TODO(synk): stride > 1 not implemented (the module's default is stride=1).
    assert stride == 1, "only stride=1 supported in this kernel"
    N, Cin, H, W = x_nchw.shape
    K = w1.shape[-1]
    Cout = w2.shape[0]
    assert 2 * padding == K - 1, "only 'same'-size output supported"
    L = H * W

    # ---- algebraic fusion of the two linear stages (tiny, wrapper-side) -----
    w2_2d = w2.reshape(Cout, Cin).astype(jnp.float32)
    # Wf[co, ci, ky, kx] = sum_m w2[co, m] * w1[m, ci, ky, kx]
    wf = jnp.einsum("om,mchw->ochw", w2_2d, w1.astype(jnp.float32))
    wf = wf.transpose(2, 3, 0, 1).reshape(K * K, Cout, Cin)     # tap-major
    bf = (w2_2d @ b1.astype(jnp.float32)
          + b2.astype(jnp.float32)).reshape(Cout, 1)

    # ---- per-tap edge masks (host-built constant; exact jnp.pad semantics) ---
    hh, ww = np.meshgrid(np.arange(H), np.arange(W), indexing="ij")
    masks = np.zeros((K * K, 1, L), np.float32)
    t = 0
    for ky in range(K):
        for kx in range(K):
            dy, dx = ky - padding, kx - padding
            valid = ((hh + dy >= 0) & (hh + dy < H) &
                     (ww + dx >= 0) & (ww + dx < W))
            masks[t, 0, :] = valid.reshape(L)
            t += 1
    masks = jnp.asarray(masks)

    # ---- free minor-dim reshape: NCHW -> (N, C, H*W); no transpose, no pad ---
    x_flat = x_nchw.reshape(N, Cin, L)

    kernel = functools.partial(_dsconv_kernel, H=H, W=W, K=K, pad=padding)

    out_flat = pl.pallas_call(
        kernel,
        out_shape=jax.ShapeDtypeStruct((N, Cout, L), x_nchw.dtype),
        grid_spec=pltpu.PrefetchScalarGridSpec(
            num_scalar_prefetch=0,
            grid=(N,),
            in_specs=[
                pl.BlockSpec((1, Cin, L), lambda n: (n, 0, 0)),
                pl.BlockSpec((K * K, Cout, Cin), lambda n: (0, 0, 0)),
                pl.BlockSpec((Cout, 1), lambda n: (0, 0)),
                pl.BlockSpec((K * K, 1, L), lambda n: (0, 0, 0)),
            ],
            out_specs=pl.BlockSpec((1, Cout, L), lambda n: (n, 0, 0)),
        ),
        compiler_params=pltpu.CompilerParams(
            dimension_semantics=("parallel",)),
    )(x_flat, wf, bf, masks)

    # free minor-dim split back to NCHW
    return out_flat.reshape(N, Cout, H, W)


def _reference(x, w1, b1, w2, b2, padding=1):
    y = lax.conv_general_dilated(
        x, w1, window_strides=(1, 1), padding=[(padding, padding)] * 2,
        dimension_numbers=("NCHW", "OIHW", "NCHW"))
    y = y + b1.reshape(1, -1, 1, 1)
    z = lax.conv_general_dilated(
        y, w2, window_strides=(1, 1), padding=[(0, 0)] * 2,
        dimension_numbers=("NCHW", "OIHW", "NCHW"))
    return z + b2.reshape(1, -1, 1, 1)


if __name__ == "__main__":
    key = jax.random.PRNGKey(0)
    N, Cin, Cout, H, W, K = 2, 4, 8, 16, 16, 3

    k_x, k_w1, k_b1, k_w2, k_b2 = jax.random.split(key, 5)
    x = jax.random.normal(k_x, (N, Cin, H, W), jnp.float32)
    # Synthetic parameters (shapes match nn.Conv2d layers in the module).
    w1 = jax.random.normal(k_w1, (Cin, Cin, K, K), jnp.float32) * 0.1
    b1 = jax.random.normal(k_b1, (Cin,), jnp.float32) * 0.1
    w2 = jax.random.normal(k_w2, (Cout, Cin, 1, 1), jnp.float32) * 0.1
    b2 = jax.random.normal(k_b2, (Cout,), jnp.float32) * 0.1

    fwd = jax.jit(functools.partial(dsconv_forward, stride=1, padding=1))
    out = fwd(x, w1, b1, w2, b2)
    jax.block_until_ready(out)

    ref = _reference(x, w1, b1, w2, b2, padding=1)
    assert out.shape == (N, Cout, H, W)
    assert jnp.allclose(out, ref, atol=1e-4, rtol=1e-4)

    print("KERNEL_OK")
</pallas_src>

<mosaic_0001>
module attributes {stable_mosaic.version = 11 : i64} {
  func.func @_dsconv_kernel(%arg0: i32, %arg1: memref<1x4x256xf32, #tpu.memory_space<vmem>>, %arg2: memref<9x8x4xf32, #tpu.memory_space<vmem>>, %arg3: memref<8x1xf32, #tpu.memory_space<vmem>>, %arg4: memref<9x1x256xf32, #tpu.memory_space<vmem>>, %arg5: memref<1x8x256xf32, #tpu.memory_space<vmem>>) attributes {dimension_semantics = [#tpu.dimension_semantics<parallel>], iteration_bounds = array<i64: 2>, scalar_prefetch = 0 : i64, scratch_operands = 0 : i64, tpu.core_type = #tpu.core_type<tc>, window_params = [{transform_indices = @transform_0, window_bounds = array<i64: 1, 4, 256>}, {pipeline_mode = #tpu.pipeline_mode<synchronous>, transform_indices = @transform_1, window_bounds = array<i64: 9, 8, 4>}, {pipeline_mode = #tpu.pipeline_mode<synchronous>, transform_indices = @transform_2, window_bounds = array<i64: 8, 1>}, {pipeline_mode = #tpu.pipeline_mode<synchronous>, transform_indices = @transform_3, window_bounds = array<i64: 9, 1, 256>}, {transform_indices = @transform_4, window_bounds = array<i64: 1, 8, 256>}]} {
    %c0 = arith.constant 0 : index
    %c0_0 = arith.constant 0 : index
    %c0_1 = arith.constant 0 : index
    %0 = vector.load %arg1[%c0, %c0_0, %c0_1] : memref<1x4x256xf32, #tpu.memory_space<vmem>>, vector<1x4x256xf32>
    %1 = vector.shape_cast %0 : vector<1x4x256xf32> to vector<4x256xf32>
    %cst = arith.constant 0.000000e+00 : f32
    %2 = vector.broadcast %cst : f32 to vector<8x256xf32>
    %3 = vector.extract_strided_slice %1 {offsets = [0, 239], sizes = [4, 17], strides = [1, 1]} : vector<4x256xf32> to vector<4x17xf32>
    %4 = vector.extract_strided_slice %1 {offsets = [0, 0], sizes = [4, 239], strides = [1, 1]} : vector<4x256xf32> to vector<4x239xf32>
    %5 = tpu.concatenate %3, %4 in 1 : vector<4x17xf32>, vector<4x239xf32> -> vector<4x256xf32>
    %c0_2 = arith.constant 0 : index
    %c0_3 = arith.constant 0 : index
    %c0_4 = arith.constant 0 : index
    %6 = vector.load %arg4[%c0_2, %c0_3, %c0_4] : memref<9x1x256xf32, #tpu.memory_space<vmem>>, vector<1x1x256xf32>
    %7 = vector.shape_cast %6 : vector<1x1x256xf32> to vector<1x256xf32>
    %8 = vector.broadcast %7 : vector<1x256xf32> to vector<4x256xf32>
    %9 = arith.mulf %5, %8 : vector<4x256xf32>
    %c0_5 = arith.constant 0 : index
    %c0_6 = arith.constant 0 : index
    %c0_7 = arith.constant 0 : index
    %10 = vector.load %arg2[%c0_5, %c0_6, %c0_7] : memref<9x8x4xf32, #tpu.memory_space<vmem>>, vector<1x8x4xf32>
    %11 = vector.shape_cast %10 : vector<1x8x4xf32> to vector<8x4xf32>
    %cst_8 = arith.constant dense<0.000000e+00> : vector<8x256xf32>
    %12 = tpu.matmul %11, %9, %cst_8 {dimension_numbers = #tpu.dot_dimension_numbers<[1], [0], [0], [1], [0, 0, 1, 1], [], []>} : vector<8x4xf32>, vector<4x256xf32>, vector<8x256xf32> -> vector<8x256xf32>
    %13 = arith.addf %2, %12 : vector<8x256xf32>
    %14 = vector.extract_strided_slice %1 {offsets = [0, 240], sizes = [4, 16], strides = [1, 1]} : vector<4x256xf32> to vector<4x16xf32>
    %15 = vector.extract_strided_slice %1 {offsets = [0, 0], sizes = [4, 240], strides = [1, 1]} : vector<4x256xf32> to vector<4x240xf32>
    %16 = tpu.concatenate %14, %15 in 1 : vector<4x16xf32>, vector<4x240xf32> -> vector<4x256xf32>
    %c1 = arith.constant 1 : index
    %c0_9 = arith.constant 0 : index
    %c0_10 = arith.constant 0 : index
    %17 = vector.load %arg4[%c1, %c0_9, %c0_10] : memref<9x1x256xf32, #tpu.memory_space<vmem>>, vector<1x1x256xf32>
    %18 = vector.shape_cast %17 : vector<1x1x256xf32> to vector<1x256xf32>
    %19 = vector.broadcast %18 : vector<1x256xf32> to vector<4x256xf32>
    %20 = arith.mulf %16, %19 : vector<4x256xf32>
    %c1_11 = arith.constant 1 : index
    %c0_12 = arith.constant 0 : index
    %c0_13 = arith.constant 0 : index
    %21 = vector.load %arg2[%c1_11, %c0_12, %c0_13] : memref<9x8x4xf32, #tpu.memory_space<vmem>>, vector<1x8x4xf32>
    %22 = vector.shape_cast %21 : vector<1x8x4xf32> to vector<8x4xf32>
    %cst_14 = arith.constant dense<0.000000e+00> : vector<8x256xf32>
    %23 = tpu.matmul %22, %20, %cst_14 {dimension_numbers = #tpu.dot_dimension_numbers<[1], [0], [0], [1], [0, 0, 1, 1], [], []>} : vector<8x4xf32>, vector<4x256xf32>, vector<8x256xf32> -> vector<8x256xf32>
    %24 = arith.addf %13, %23 : vector<8x256xf32>
    %25 = vector.extract_strided_slice %1 {offsets = [0, 241], sizes = [4, 15], strides = [1, 1]} : vector<4x256xf32> to vector<4x15xf32>
    %26 = vector.extract_strided_slice %1 {offsets = [0, 0], sizes = [4, 241], strides = [1, 1]} : vector<4x256xf32> to vector<4x241xf32>
    %27 = tpu.concatenate %25, %26 in 1 : vector<4x15xf32>, vector<4x241xf32> -> vector<4x256xf32>
    %c2 = arith.constant 2 : index
    %c0_15 = arith.constant 0 : index
    %c0_16 = arith.constant 0 : index
    %28 = vector.load %arg4[%c2, %c0_15, %c0_16] : memref<9x1x256xf32, #tpu.memory_space<vmem>>, vector<1x1x256xf32>
    %29 = vector.shape_cast %28 : vector<1x1x256xf32> to vector<1x256xf32>
    %30 = vector.broadcast %29 : vector<1x256xf32> to vector<4x256xf32>
    %31 = arith.mulf %27, %30 : vector<4x256xf32>
    %c2_17 = arith.constant 2 : index
    %c0_18 = arith.constant 0 : index
    %c0_19 = arith.constant 0 : index
    %32 = vector.load %arg2[%c2_17, %c0_18, %c0_19] : memref<9x8x4xf32, #tpu.memory_space<vmem>>, vector<1x8x4xf32>
    %33 = vector.shape_cast %32 : vector<1x8x4xf32> to vector<8x4xf32>
    %cst_20 = arith.constant dense<0.000000e+00> : vector<8x256xf32>
    %34 = tpu.matmul %33, %31, %cst_20 {dimension_numbers = #tpu.dot_dimension_numbers<[1], [0], [0], [1], [0, 0, 1, 1], [], []>} : vector<8x4xf32>, vector<4x256xf32>, vector<8x256xf32> -> vector<8x256xf32>
    %35 = arith.addf %24, %34 : vector<8x256xf32>
    %36 = vector.extract_strided_slice %1 {offsets = [0, 255], sizes = [4, 1], strides = [1, 1]} : vector<4x256xf32> to vector<4x1xf32>
    %37 = vector.extract_strided_slice %1 {offsets = [0, 0], sizes = [4, 255], strides = [1, 1]} : vector<4x256xf32> to vector<4x255xf32>
    %38 = tpu.concatenate %36, %37 in 1 : vector<4x1xf32>, vector<4x255xf32> -> vector<4x256xf32>
    %c3 = arith.constant 3 : index
    %c0_21 = arith.constant 0 : index
    %c0_22 = arith.constant 0 : index
    %39 = vector.load %arg4[%c3, %c0_21, %c0_22] : memref<9x1x256xf32, #tpu.memory_space<vmem>>, vector<1x1x256xf32>
    %40 = vector.shape_cast %39 : vector<1x1x256xf32> to vector<1x256xf32>
    %41 = vector.broadcast %40 : vector<1x256xf32> to vector<4x256xf32>
    %42 = arith.mulf %38, %41 : vector<4x256xf32>
    %c3_23 = arith.constant 3 : index
    %c0_24 = arith.constant 0 : index
    %c0_25 = arith.constant 0 : index
    %43 = vector.load %arg2[%c3_23, %c0_24, %c0_25] : memref<9x8x4xf32, #tpu.memory_space<vmem>>, vector<1x8x4xf32>
    %44 = vector.shape_cast %43 : vector<1x8x4xf32> to vector<8x4xf32>
    %cst_26 = arith.constant dense<0.000000e+00> : vector<8x256xf32>
    %45 = tpu.matmul %44, %42, %cst_26 {dimension_numbers = #tpu.dot_dimension_numbers<[1], [0], [0], [1], [0, 0, 1, 1], [], []>} : vector<8x4xf32>, vector<4x256xf32>, vector<8x256xf32> -> vector<8x256xf32>
    %46 = arith.addf %35, %45 : vector<8x256xf32>
    %c4 = arith.constant 4 : index
    %c0_27 = arith.constant 0 : index
    %c0_28 = arith.constant 0 : index
    %47 = vector.load %arg4[%c4, %c0_27, %c0_28] : memref<9x1x256xf32, #tpu.memory_space<vmem>>, vector<1x1x256xf32>
    %48 = vector.shape_cast %47 : vector<1x1x256xf32> to vector<1x256xf32>
    %49 = vector.broadcast %48 : vector<1x256xf32> to vector<4x256xf32>
    %50 = arith.mulf %1, %49 : vector<4x256xf32>
    %c4_29 = arith.constant 4 : index
    %c0_30 = arith.constant 0 : index
    %c0_31 = arith.constant 0 : index
    %51 = vector.load %arg2[%c4_29, %c0_30, %c0_31] : memref<9x8x4xf32, #tpu.memory_space<vmem>>, vector<1x8x4xf32>
    %52 = vector.shape_cast %51 : vector<1x8x4xf32> to vector<8x4xf32>
    %cst_32 = arith.constant dense<0.000000e+00> : vector<8x256xf32>
    %53 = tpu.matmul %52, %50, %cst_32 {dimension_numbers = #tpu.dot_dimension_numbers<[1], [0], [0], [1], [0, 0, 1, 1], [], []>} : vector<8x4xf32>, vector<4x256xf32>, vector<8x256xf32> -> vector<8x256xf32>
    %54 = arith.addf %46, %53 : vector<8x256xf32>
    %55 = vector.extract_strided_slice %1 {offsets = [0, 1], sizes = [4, 255], strides = [1, 1]} : vector<4x256xf32> to vector<4x255xf32>
    %56 = vector.extract_strided_slice %1 {offsets = [0, 0], sizes = [4, 1], strides = [1, 1]} : vector<4x256xf32> to vector<4x1xf32>
    %57 = tpu.concatenate %55, %56 in 1 : vector<4x255xf32>, vector<4x1xf32> -> vector<4x256xf32>
    %c5 = arith.constant 5 : index
    %c0_33 = arith.constant 0 : index
    %c0_34 = arith.constant 0 : index
    %58 = vector.load %arg4[%c5, %c0_33, %c0_34] : memref<9x1x256xf32, #tpu.memory_space<vmem>>, vector<1x1x256xf32>
    %59 = vector.shape_cast %58 : vector<1x1x256xf32> to vector<1x256xf32>
    %60 = vector.broadcast %59 : vector<1x256xf32> to vector<4x256xf32>
    %61 = arith.mulf %57, %60 : vector<4x256xf32>
    %c5_35 = arith.constant 5 : index
    %c0_36 = arith.constant 0 : index
    %c0_37 = arith.constant 0 : index
    %62 = vector.load %arg2[%c5_35, %c0_36, %c0_37] : memref<9x8x4xf32, #tpu.memory_space<vmem>>, vector<1x8x4xf32>
    %63 = vector.shape_cast %62 : vector<1x8x4xf32> to vector<8x4xf32>
    %cst_38 = arith.constant dense<0.000000e+00> : vector<8x256xf32>
    %64 = tpu.matmul %63, %61, %cst_38 {dimension_numbers = #tpu.dot_dimension_numbers<[1], [0], [0], [1], [0, 0, 1, 1], [], []>} : vector<8x4xf32>, vector<4x256xf32>, vector<8x256xf32> -> vector<8x256xf32>
    %65 = arith.addf %54, %64 : vector<8x256xf32>
    %66 = vector.extract_strided_slice %1 {offsets = [0, 15], sizes = [4, 241], strides = [1, 1]} : vector<4x256xf32> to vector<4x241xf32>
    %67 = vector.extract_strided_slice %1 {offsets = [0, 0], sizes = [4, 15], strides = [1, 1]} : vector<4x256xf32> to vector<4x15xf32>
    %68 = tpu.concatenate %66, %67 in 1 : vector<4x241xf32>, vector<4x15xf32> -> vector<4x256xf32>
    %c6 = arith.constant 6 : index
    %c0_39 = arith.constant 0 : index
    %c0_40 = arith.constant 0 : index
    %69 = vector.load %arg4[%c6, %c0_39, %c0_40] : memref<9x1x256xf32, #tpu.memory_space<vmem>>, vector<1x1x256xf32>
    %70 = vector.shape_cast %69 : vector<1x1x256xf32> to vector<1x256xf32>
    %71 = vector.broadcast %70 : vector<1x256xf32> to vector<4x256xf32>
    %72 = arith.mulf %68, %71 : vector<4x256xf32>
    %c6_41 = arith.constant 6 : index
    %c0_42 = arith.constant 0 : index
    %c0_43 = arith.constant 0 : index
    %73 = vector.load %arg2[%c6_41, %c0_42, %c0_43] : memref<9x8x4xf32, #tpu.memory_space<vmem>>, vector<1x8x4xf32>
    %74 = vector.shape_cast %73 : vector<1x8x4xf32> to vector<8x4xf32>
    %cst_44 = arith.constant dense<0.000000e+00> : vector<8x256xf32>
    %75 = tpu.matmul %74, %72, %cst_44 {dimension_numbers = #tpu.dot_dimension_numbers<[1], [0], [0], [1], [0, 0, 1, 1], [], []>} : vector<8x4xf32>, vector<4x256xf32>, vector<8x256xf32> -> vector<8x256xf32>
    %76 = arith.addf %65, %75 : vector<8x256xf32>
    %77 = vector.extract_strided_slice %1 {offsets = [0, 16], sizes = [4, 240], strides = [1, 1]} : vector<4x256xf32> to vector<4x240xf32>
    %78 = vector.extract_strided_slice %1 {offsets = [0, 0], sizes = [4, 16], strides = [1, 1]} : vector<4x256xf32> to vector<4x16xf32>
    %79 = tpu.concatenate %77, %78 in 1 : vector<4x240xf32>, vector<4x16xf32> -> vector<4x256xf32>
    %c7 = arith.constant 7 : index
    %c0_45 = arith.constant 0 : index
    %c0_46 = arith.constant 0 : index
    %80 = vector.load %arg4[%c7, %c0_45, %c0_46] : memref<9x1x256xf32, #tpu.memory_space<vmem>>, vector<1x1x256xf32>
    %81 = vector.shape_cast %80 : vector<1x1x256xf32> to vector<1x256xf32>
    %82 = vector.broadcast %81 : vector<1x256xf32> to vector<4x256xf32>
    %83 = arith.mulf %79, %82 : vector<4x256xf32>
    %c7_47 = arith.constant 7 : index
    %c0_48 = arith.constant 0 : index
    %c0_49 = arith.constant 0 : index
    %84 = vector.load %arg2[%c7_47, %c0_48, %c0_49] : memref<9x8x4xf32, #tpu.memory_space<vmem>>, vector<1x8x4xf32>
    %85 = vector.shape_cast %84 : vector<1x8x4xf32> to vector<8x4xf32>
    %cst_50 = arith.constant dense<0.000000e+00> : vector<8x256xf32>
    %86 = tpu.matmul %85, %83, %cst_50 {dimension_numbers = #tpu.dot_dimension_numbers<[1], [0], [0], [1], [0, 0, 1, 1], [], []>} : vector<8x4xf32>, vector<4x256xf32>, vector<8x256xf32> -> vector<8x256xf32>
    %87 = arith.addf %76, %86 : vector<8x256xf32>
    %88 = vector.extract_strided_slice %1 {offsets = [0, 17], sizes = [4, 239], strides = [1, 1]} : vector<4x256xf32> to vector<4x239xf32>
    %89 = vector.extract_strided_slice %1 {offsets = [0, 0], sizes = [4, 17], strides = [1, 1]} : vector<4x256xf32> to vector<4x17xf32>
    %90 = tpu.concatenate %88, %89 in 1 : vector<4x239xf32>, vector<4x17xf32> -> vector<4x256xf32>
    %c8 = arith.constant 8 : index
    %c0_51 = arith.constant 0 : index
    %c0_52 = arith.constant 0 : index
    %91 = vector.load %arg4[%c8, %c0_51, %c0_52] : memref<9x1x256xf32, #tpu.memory_space<vmem>>, vector<1x1x256xf32>
    %92 = vector.shape_cast %91 : vector<1x1x256xf32> to vector<1x256xf32>
    %93 = vector.broadcast %92 : vector<1x256xf32> to vector<4x256xf32>
    %94 = arith.mulf %90, %93 : vector<4x256xf32>
    %c8_53 = arith.constant 8 : index
    %c0_54 = arith.constant 0 : index
    %c0_55 = arith.constant 0 : index
    %95 = vector.load %arg2[%c8_53, %c0_54, %c0_55] : memref<9x8x4xf32, #tpu.memory_space<vmem>>, vector<1x8x4xf32>
    %96 = vector.shape_cast %95 : vector<1x8x4xf32> to vector<8x4xf32>
    %cst_56 = arith.constant dense<0.000000e+00> : vector<8x256xf32>
    %97 = tpu.matmul %96, %94, %cst_56 {dimension_numbers = #tpu.dot_dimension_numbers<[1], [0], [0], [1], [0, 0, 1, 1], [], []>} : vector<8x4xf32>, vector<4x256xf32>, vector<8x256xf32> -> vector<8x256xf32>
    %98 = arith.addf %87, %97 : vector<8x256xf32>
    %c0_57 = arith.constant 0 : index
    %c0_58 = arith.constant 0 : index
    %99 = vector.load %arg3[%c0_57, %c0_58] : memref<8x1xf32, #tpu.memory_space<vmem>>, vector<8x1xf32>
    %100 = vector.broadcast %99 : vector<8x1xf32> to vector<8x256xf32>
    %101 = arith.addf %98, %100 : vector<8x256xf32>
    %c0_59 = arith.constant 0 : index
    %c0_60 = arith.constant 0 : index
    %c0_61 = arith.constant 0 : index
    %102 = vector.load %arg5[%c0_59, %c0_60, %c0_61] : memref<1x8x256xf32, #tpu.memory_space<vmem>>, vector<1x8x256xf32>
    %103 = vector.shape_cast %102 : vector<1x8x256xf32> to vector<8x256xf32>
    %104 = vector.shape_cast %101 : vector<8x256xf32> to vector<1x8x256xf32>
    tpu.vector_store %arg5[%c0_59, %c0_60, %c0_61], %104 {strides = array<i32>} : memref<1x8x256xf32, #tpu.memory_space<vmem>>, vector<1x8x256xf32>,
    return
  }
  func.func @transform_0(%arg0: i32) -> (i32, i32, i32) {
    %c0_i32 = arith.constant 0 : i32
    %c0_i32_0 = arith.constant 0 : i32
    %c0_i32_1 = arith.constant 0 : i32
    return %arg0, %c0_i32, %c0_i32_0 : i32, i32, i32
  }
  func.func @transform_1(%arg0: i32) -> (i32, i32, i32) {
    %c0_i32 = arith.constant 0 : i32
    %c0_i32_0 = arith.constant 0 : i32
    %c0_i32_1 = arith.constant 0 : i32
    %c0_i32_2 = arith.constant 0 : i32
    return %c0_i32, %c0_i32_0, %c0_i32_1 : i32, i32, i32
  }
  func.func @transform_2(%arg0: i32) -> (i32, i32) {
    %c0_i32 = arith.constant 0 : i32
    %c0_i32_0 = arith.constant 0 : i32
    %c0_i32_1 = arith.constant 0 : i32
    return %c0_i32, %c0_i32_0 : i32, i32
  }
  func.func @transform_3(%arg0: i32) -> (i32, i32, i32) {
    %c0_i32 = arith.constant 0 : i32
    %c0_i32_0 = arith.constant 0 : i32
    %c0_i32_1 = arith.constant 0 : i32
    %c0_i32_2 = arith.constant 0 : i32
    return %c0_i32, %c0_i32_0, %c0_i32_1 : i32, i32, i32
  }
  func.func @transform_4(%arg0: i32) -> (i32, i32, i32) {
    %c0_i32 = arith.constant 0 : i32
    %c0_i32_0 = arith.constant 0 : i32
    %c0_i32_1 = arith.constant 0 : i32
    return %arg0, %c0_i32, %c0_i32_0 : i32, i32, i32
  }
}

</mosaic_0001>

<bundles_post_ra>
// kernel: dsconv_forward.1
= control target key start
LH: loop header
LB: loop body
LE: loop exit
PB: predicated region body
PF: predicated region fallthrough
CT: control target
= control target key end

     0   :  { %s1367_s15 = smov 0   ;;  %s1505_s0 = inlined_call_operand.vmem [shape: f32[2,4,256], index: 0, kind: input, shape index: {}]   ;;  %s1506_s1 = inlined_call_operand.vmem [shape: f32[9,8,4], index: 1, kind: input, shape index: {}]   ;;  %s1507_s2 = inlined_call_operand.vmem [shape: f32[8,1], index: 2, kind: input, shape index: {}]   ;;  %s1508_s3 = inlined_call_operand.vmem [shape: f32[9,1,256], index: 3, kind: input, shape index: {}]   ;;  %s1509_s4 = inlined_call_operand.vmem [shape: f32[2,8,256], index: 4, kind: output, shape index: {}]  }
   0x1 LB: > { %s1232_s16 = sadd.s32 4294967295, %s1330_s15   ;;  %p1236_p0 = scmp.ge.s32.totalorder %s1330_s15, 1  ;;  %s1330_s15 = sphi %s1367_s15, %s14_s15  }
   0x2   : > { %p162_p1 = scmp.lt.s32.totalorder %s1330_s15, 3 }
   0x4   : > { %p163_p2 = pnand %p1236_p0, %p162_p1 }
   0x5   : > { %p188_p3 = scmp.lt.s32.totalorder (!%p163_p2), %s1232_s16, 1  ;;  %v213_v0 = vlaneseq (!%p163_p2)  ;;  %v1332_v1 = vmov (!%p163_p2), 0.0   ;;  %v1259_v3 = vld [vmem:[%s1508_s3 + $0x8] sm:$0x3] (!%p163_p2)  ;;  %s1333_s23 = smov (!%p163_p2), 127   ;;  %vm257_vm0 = vcmask (!%p163_p2), 1043456  }
   0x6   : > { %166 = sbr.rel (%p163_p2) target bundleno = 383 (0x17f), region = 36  ;;  %722 = vmatprep.mubr.f32.mxu0 (!%p163_p2), %v1332_v1  ;;  %328 = vmatprep.mubr.f32.mxu1 (!%p163_p2), %v1332_v1  ;;  %s1334_s24 = smov (!%p163_p2), 16   ;;  %vm253_vm1 = vcmask (!%p163_p2), 31744   ;;  %v1260_v13 = vld [vmem:[%s1506_s1 + $0x20] sm:$0xff] (!%p163_p2)  ;;  %v1339_v14 = vmov (!%p163_p2), 0   ;;  %vm735_vm2 = vcmask (!%p163_p2), 1039360  }
   0x7   : > { %v214_v2 = vshrl.u32 (!%p163_p2), %v213_v0, 7  ;;  %s1335_s27 = smov (!%p163_p2), 17   ;;  %s1336_s28 = smov (!%p163_p2), 113   ;;  %1322 = vset.pattern.permute.xlu0 (!%p163_p2), %v1339_v14  ;;  %v1167_v15 = vld [vmem:[%s1507_s2] sm:$0xff] (!%p163_p2)  ;;  %v1264_v16 = vld [vmem:[%s1508_s3 + $0xa] sm:$0x3] (!%p163_p2) }
   0x8   : > { %s1337_s29 = smov (!%p163_p2), 15   ;;  %s1338_s30 = smov (!%p163_p2), 112   ;;  %v1241_v17 = vld [vmem:[%s1508_s3 + $0x2] sm:$0x3] (!%p163_p2)  ;;  %vm231_vm3 = vcmask (!%p163_p2), 130048   ;;  %vm206_vm4 = vcmask (!%p163_p2), 138240  }
   0x9   : > { %v1383_v4 = vsub.s32 (!%p163_p2), 0, %v214_v2  ;;  %v1385_v5 = vsub.s32 (!%p163_p2), 1, %v214_v2  ;;  %s1340_s5 = smov (!%p163_p2), 1   ;;  %s1341_s6 = smov (!%p163_p2), 111   ;;  %v211_v20 = vld [vmem:[%s1508_s3] sm:$0x3] (!%p163_p2) }
   0xa   : > { %v1269_v37 = vld [vmem:[%s1508_s3 + $0xc] sm:$0x3] (!%p163_p2)  ;;  %vm844_vm5 = vcmask (!%p163_p2), 924672   ;;  %v1249_v48 = vld [vmem:[%s1508_s3 + $0x4] sm:$0x3] (!%p163_p2)  ;;  %vm420_vm6 = vcmask (!%p163_p2), 121856  }
   0xb   : > { %v639_v7 = vrot.slane (!%p163_p2), %v1259_v3, %v1383_v4  ;;  %v643_v8 = vrot.slane (!%p163_p2), %v1259_v3, %v1385_v5  ;;  %v747_v21 = vrot.slane (!%p163_p2), %v1264_v16, %v1383_v4  ;;  %v751_v22 = vrot.slane (!%p163_p2), %v1264_v16, %v1385_v5  ;;  %v1242_v38 = vld [vmem:[%s1506_s1 + $0x8] sm:$0xff] (!%p163_p2)  ;;  %v225_v58 = vld [vmem:[%s1506_s1] sm:$0xff] (!%p163_p2)  ;;  %v1270_v59 = vld [vmem:[%s1506_s1 + $0x30] sm:$0xff] (!%p163_p2) }
   0xc   : > { %v242_v23 = vrot.slane (!%p163_p2), %v1241_v17, %v1383_v4  ;;  %v246_v24 = vrot.slane (!%p163_p2), %v1241_v17, %v1385_v5  ;;  %v216_v27 = vrot.slane (!%p163_p2), %v211_v20, %v1383_v4  ;;  %v220_v28 = vrot.slane (!%p163_p2), %v211_v20, %v1385_v5  ;;  %v1265_v39 = vld [vmem:[%s1506_s1 + $0x28] sm:$0xff] (!%p163_p2)  ;;  %v1279_v16 = vld [vmem:[%s1508_s3 + $0x10] sm:$0x3] (!%p163_p2) }
   0xd   : > { %s1511_s16 = smov (!%p188_p3, %s1232_s16), 1  ;;  %v644_v10 = vcombine.low %v639_v7, %v643_v8  ;;  %v856_v44 = vrot.slane %v1269_v37, %v1383_v4  ;;  %v860_v47 = vrot.slane %v1269_v37, %v1385_v5  ;;  %v431_v55 = vrot.slane %v1249_v48, %v1383_v4  ;;  %v1274_v57 = vld [vmem:[%s1508_s3 + $0xe] sm:$0x3]  ;;  %v1254_v7 = vld [vmem:[%s1508_s3 + $0x6] sm:$0x3]  ;;  %v1250_v17 = vld [vmem:[%s1506_s1 + $0x10] sm:$0xff] }
   0xe   : > { %s1286_s19 = sshll.u32 %s1511_s16, 3  ;;  %v435_v56 = vrot.slane %v1249_v48, %v1385_v5  ;;  %v965_v0 = vrot.slane %v1274_v57, %v1383_v4  ;;  %vm953_vm7 = vcmask 916480   ;;  %vm529_vm8 = vcmask 7168  }
   0xf   : > { %s192_s22 = scalar_lea.vmem %s1505_s0, %s1286_s19  ;;  %v540_v14 = vrot.slane %v1254_v7, %v1383_v4  ;;  %vm1062_vm9 = vcmask 908288   ;;  %s1287_s19 = sshll.u32 %s1511_s16, 4 }
  0x10   : > { %v198_v6 = vld [vmem:[%s192_s22] sm:$0xff]  ;;  %s197_s22 = scalar_lea.vmem %s1509_s4, %s1287_s19 }
  0x11   : > { %731 = vrot.lane.b32.xlu1 %v198_v6, %s1333_s23  ;;  %229 = vrot.lane.b32.xlu0 %v198_v6, %s1334_s24  ;;  %v200_v9 = vcombine.high %v198_v6, %v198_v6  ;;  %v646_v11 = vmul.f32 %v644_v10, %v198_v6 }
  0x13   : > { %v650_v12 = vcombine.high %v646_v11, %v646_v11 }
  0x15   : > { %733 = vrot.lane.b32.xlu1 %v200_v9, %s1333_s23  ;;  %226 = vrot.lane.b32.xlu0 %v200_v9, %s1334_s24 }
  0x16   : > { %1261 = vmatprep.subr.msk.mxu0 %vm257_vm0, %v650_v12 }
  0x17   : > { %1262 = vmatpush1.msk.msra.mxu0 %vm257_vm0, %v646_v11 }
  0x18   : > { %1263 = vmatmul.mubr.msk.f32.vlgmr.msra.gmra.mrb[0].mxu0 %vm253_vm1, %v1260_v13 }
  0x19   : > { %204 = vrot.lane.b32.xlu1 %v198_v6, %s1335_s27  ;;  %201 = vrot.lane.b32.xlu0 %v200_v9, %s1335_s27 }
  0x1a   : > { %831 = vmatprep.mubr.f32.mxu0 %v1332_v1 }
  0x1d   : > { %842 = vrot.lane.b32.xlu1 %v200_v9, %s1336_s28  ;;  %840 = vrot.lane.b32.xlu0 %v198_v6, %s1336_s28 }
  0x21   : > { %418 = vrot.lane.b32.xlu1 %v198_v6, %s1337_s29  ;;  %415 = vrot.lane.b32.xlu0 %v200_v9, %s1337_s29 }
  0x25   : > { %951 = vrot.lane.b32.xlu1 %v200_v9, %s1338_s30  ;;  %949 = vrot.lane.b32.xlu0 %v198_v6, %s1338_s30 }
  0x29   : > { %527 = vrot.lane.b32.xlu1 %v198_v6, %s1340_s5  ;;  %524 = vrot.lane.b32.xlu0 %v200_v9, %s1340_s5 }
  0x2d   : > { %1060 = vrot.lane.b32.xlu1 %v200_v9, %s1341_s6  ;;  %1058 = vrot.lane.b32.xlu0 %v198_v6, %s1341_s6  ;;  %v969_v6 = vrot.slane %v1274_v57, %v1385_v5 }
  0x31   : > { %1170 = vperm.xlu0 %1322, %v1167_v15   ;;  %v544_v15 = vrot.slane %v1254_v7, %v1385_v5 }
  0x83   : > { %v732_v18 = vpop.permute.xlu1 %731  ;;  %v230_v19 = vpop.permute.xlu0 %229 }
  0x87   : > { %v734_v25 = vpop.permute.xlu1 %733  ;;  %v227_v26 = vpop.permute.xlu0 %226 }
  0x88   : > { %v736_v29 = vsel %vm735_vm2, %v732_v18, %v734_v25  ;;  %v740_v30 = vsel %vm735_vm2, %v734_v25, %v732_v18  ;;  %v232_v31 = vsel %vm231_vm3, %v230_v19, %v227_v26  ;;  %v235_v32 = vsel %vm231_vm3, %v227_v26, %v230_v19  ;;  %v1275_v18 = vld [vmem:[%s1506_s1 + $0x38] sm:$0xff] }
  0x89   : > { %v754_v33 = vmul.f32 %v747_v21, %v736_v29  ;;  %v755_v34 = vmul.f32 %v751_v22, %v740_v30  ;;  %v249_v35 = vmul.f32 %v242_v23, %v235_v32  ;;  %v250_v36 = vmul.f32 %v246_v24, %v232_v31  ;;  %v1255_v32 = vld [vmem:[%s1506_s1 + $0x18] sm:$0xff] }
  0x8a   : > { %v1074_v23 = vrot.slane %v1279_v16, %v1383_v4  ;;  %v1078_v26 = vrot.slane %v1279_v16, %v1385_v5  ;;  %v1280_v5 = vld [vmem:[%s1506_s1 + $0x40] sm:$0xff] }
  0x8b   : > { %1266 = vmatprep.subr.msk.mxu0 %vm257_vm0, %v755_v34  ;;  %v205_v40 = vpop.permute.xlu1 %204  ;;  %1243 = vmatprep.subr.msk.mxu1 %vm257_vm0, %v250_v36  ;;  %v202_v41 = vpop.permute.xlu0 %201 }
  0x8c   : > { %v207_v42 = vsel %vm206_vm4, %v205_v40, %v202_v41  ;;  %v210_v43 = vsel %vm206_vm4, %v202_v41, %v205_v40  ;;  %1244 = vmatpush1.msk.msra.mxu1 %vm257_vm0, %v249_v35  ;;  %1267 = vmatpush1.msk.msra.mxu0 %vm257_vm0, %v754_v33 }
  0x8d   : > { %v223_v45 = vmul.f32 %v216_v27, %v210_v43  ;;  %v224_v46 = vmul.f32 %v220_v28, %v207_v42  ;;  %1245 = vmatmul.mubr.msk.f32.vlgmr.msra.gmra.mrb[0].mxu1 %vm253_vm1, %v1242_v38  ;;  %1268 = vmatmul.mubr.msk.f32.vlgmr.msra.gmra.mrb[0].mxu0 %vm253_vm1, %v1265_v39 }
  0x8e   : > { %408 = vmatprep.mubr.f32.mxu1 %v1332_v1  ;;  %940 = vmatprep.mubr.f32.mxu0 %v1332_v1 }
  0x8f   : > { %v843_v49 = vpop.permute.xlu1 %842  ;;  %1246 = vmatprep.subr.msk.mxu1 %vm257_vm0, %v224_v46  ;;  %v841_v50 = vpop.permute.xlu0 %840 }
  0x90   : > { %v845_v51 = vsel %vm844_vm5, %v841_v50, %v843_v49  ;;  %v849_v52 = vsel %vm844_vm5, %v843_v49, %v841_v50  ;;  %1247 = vmatpush1.msk.msra.mxu1 %vm257_vm0, %v223_v45 }
  0x91   : > { %v863_v53 = vmul.f32 %v856_v44, %v845_v51  ;;  %v864_v54 = vmul.f32 %v860_v47, %v849_v52 }
  0x93   : > { %v419_v60 = vpop.permute.xlu1 %418  ;;  %1271 = vmatprep.subr.msk.mxu0 %vm257_vm0, %v864_v54  ;;  %v416_v61 = vpop.permute.xlu0 %415 }
  0x94   : > { %v421_v62 = vsel %vm420_vm6, %v419_v60, %v416_v61  ;;  %v424_v63 = vsel %vm420_vm6, %v416_v61, %v419_v60  ;;  %1272 = vmatpush1.msk.msra.mxu0 %vm257_vm0, %v863_v53 }
  0x95   : > { %v438_v2 = vmul.f32 %v431_v55, %v424_v63  ;;  %v439_v3 = vmul.f32 %v435_v56, %v421_v62  ;;  %1248 = vmatmul.mubr.msk.f32.vlgmr.msra.gmra.mrb[0].mxu1 %vm253_vm1, %v225_v58  ;;  %1273 = vmatmul.mubr.msk.f32.vlgmr.msra.gmra.mrb[0].mxu0 %vm253_vm1, %v1270_v59 }
  0x96   : > { %515 = vmatprep.mubr.f32.mxu1 %v1332_v1  ;;  %1049 = vmatprep.mubr.f32.mxu0 %v1332_v1 }
  0x97   : > { %v952_v8 = vpop.permute.xlu1 %951  ;;  %1251 = vmatprep.subr.msk.mxu1 %vm257_vm0, %v439_v3  ;;  %v950_v9 = vpop.permute.xlu0 %949 }
  0x98   : > { %v954_v10 = vsel %vm953_vm7, %v950_v9, %v952_v8  ;;  %v958_v11 = vsel %vm953_vm7, %v952_v8, %v950_v9  ;;  %1252 = vmatpush1.msk.msra.mxu1 %vm257_vm0, %v438_v2 }
  0x99   : > { %v972_v12 = vmul.f32 %v965_v0, %v954_v10  ;;  %v973_v13 = vmul.f32 %v969_v6, %v958_v11 }
  0x9b   : > { %v528_v19 = vpop.permute.xlu1 %527  ;;  %1276 = vmatprep.subr.msk.mxu0 %vm257_vm0, %v973_v13  ;;  %v525_v20 = vpop.permute.xlu0 %524 }
  0x9c   : > { %v530_v21 = vsel %vm529_vm8, %v528_v19, %v525_v20  ;;  %v533_v22 = vsel %vm529_vm8, %v525_v20, %v528_v19  ;;  %1277 = vmatpush1.msk.msra.mxu0 %vm257_vm0, %v972_v12 }
  0x9d   : > { %v547_v24 = vmul.f32 %v540_v14, %v533_v22  ;;  %v548_v25 = vmul.f32 %v544_v15, %v530_v21  ;;  %1253 = vmatmul.mubr.msk.f32.vlgmr.msra.gmra.mrb[0].mxu1 %vm253_vm1, %v1250_v17  ;;  %1278 = vmatmul.mubr.msk.f32.vlgmr.msra.gmra.mrb[0].mxu0 %vm253_vm1, %v1275_v18 }
  0x9e   : > { %624 = vmatprep.mubr.f32.mxu1 %v1332_v1  ;;  %1158 = vmatprep.mubr.f32.mxu0 %v1332_v1 }
  0x9f   : > { %v1061_v27 = vpop.permute.xlu1 %1060  ;;  %1256 = vmatprep.subr.msk.mxu1 %vm257_vm0, %v548_v25  ;;  %v1059_v28 = vpop.permute.xlu0 %1058 }
  0xa0   : > { %v1063_v29 = vsel %vm1062_vm9, %v1059_v28, %v1061_v27  ;;  %v1067_v4 = vsel %vm1062_vm9, %v1061_v27, %v1059_v28  ;;  %1257 = vmatpush1.msk.msra.mxu1 %vm257_vm0, %v547_v24 }
  0xa1   : > { %v1081_v30 = vmul.f32 %v1074_v23, %v1063_v29  ;;  %v1082_v31 = vmul.f32 %v1078_v26, %v1067_v4 }
  0xa3   : > { %1281 = vmatprep.subr.msk.mxu0 %vm257_vm0, %v1082_v31 }
  0xa4   : > { %1282 = vmatpush1.msk.msra.mxu0 %vm257_vm0, %v1081_v30 }
  0xa5   : > { %1258 = vmatmul.mubr.msk.f32.vlgmr.msra.gmra.mrb[0].mxu1 %vm253_vm1, %v1255_v32  ;;  %1283 = vmatmul.mubr.msk.f32.vlgmr.msra.gmra.mrb[0].mxu0 %vm253_vm1, %v1280_v5 }
  0xb0   : > { %v1171_v1 = vpop.permute.xlu0 %1170 }
 0x178   : > { %v626_v33 = vpop.f32.mrb[0].mxu1  ;;  %v1160_v34 = vpop.f32.mrb[0].mxu0 }
 0x179   : > { %v1288_v35 = vadd.f32 %v1160_v34, %v626_v33  ;;  %v628_v36 = vpop.f32.mrb[1].mxu1  ;;  %v1162_v37 = vpop.f32.mrb[1].mxu0 }
 0x17a   : > { %v1289_v38 = vadd.f32 %v1162_v37, %v628_v36 }
 0x17b   : > { %v1173_v39 = vadd.f32 %v1288_v35, %v1171_v1 }
 0x17c   : > { %v1174_v40 = vadd.f32 %v1289_v38, %v1171_v1 }
 0x17d   : > { %1175 = vst [vmem:[%s197_s22] sm:$0xff] %v1173_v39 }
 0x17e   : > { %1176 = vst [vmem:[%s197_s22 + $0x8] sm:$0xff] %v1174_v40 }
 0x17f PF: > { %s14_s15 = sadd.s32 1, %s1330_s15  }
 0x180   : > { %p11_p4 = scmp.ge.s32.totalorder %s14_s15, 4  }
 0x182   :  { %13 = sbr.rel (!%p11_p4) target bundleno = 1 (0x1), region = 82 }

</bundles_post_ra>
